<compile_context>
chip_gen: v7x
topology: tpu7x:2x2x1
jax: 0.10.0
libtpu: 0.0.40
codegen_flags: <defaults>
</compile_context>

<pallas_src>
import math
import functools

import jax
import jax.numpy as jnp
from jax import lax
from jax.experimental import pallas as pl
from jax.experimental.pallas import tpu as pltpu

LN_EPS = 1e-5                      # nn.LayerNorm default
_VMEM_LIMIT = 48 * 1024 * 1024     # explicit scoped-VMEM limit (headroom on v7x's 64 MiB)


# ---------------------------------------------------------------------------
# helpers
# ---------------------------------------------------------------------------
def _choose_tile_m(M):
    """Largest row tile (cap 512) that gives >=2 full grid steps; else one
    sublane-aligned padded tile.  512 rows ~ 85% of HBM roofline per the
    measured tile sweep, while leaving the pipeline >=2 steps deep."""
    for t in (512, 256, 128, 64, 32, 16, 8):
        if M // t >= 2:
            return t
    return max(8, -(-M // 8) * 8)


def _ln_f32(x_f32):
    mean = jnp.mean(x_f32, axis=-1, keepdims=True)
    diff = x_f32 - mean
    var = jnp.mean(diff * diff, axis=-1, keepdims=True)
    return diff * lax.rsqrt(var + LN_EPS)


# ---------------------------------------------------------------------------
# kernels
# ---------------------------------------------------------------------------
def fused_ln_attn_kernel(x_ref, mask_ref, g_ref, b_ref, wqkv_ref, bqkv_ref,
                         wo_ref, bo_ref, o_ref, *, H, dk, scale):
    """One batch element: LayerNorm -> packed QKV projection -> multi-head
    attention -> output projection (accumulated per head, lane-dense) ->
    residual add.  No VMEM scratch, no HBM intermediate."""
    D = H * dk
    x = x_ref[0].astype(jnp.float32)                           # [S, D]
    xn = _ln_f32(x) * g_ref[...] + b_ref[...]                  # [S, D] f32
    qkv = jnp.dot(xn.astype(wqkv_ref.dtype), wqkv_ref[...],
                  preferred_element_type=jnp.float32)          # [S, 3D] f32 acc
    qkv = qkv + bqkv_ref[...]

    # mask -> additive bias, computed once (not per head); masked_fill(mask==0,-1e9)
    m = mask_ref[0]                                            # [1, S] f32
    neg_bias = jnp.where(m == 0.0, jnp.float32(-1e9), jnp.float32(0.0))

    # residual + output-projection bias seed the accumulator
    acc = x + bo_ref[...]                                      # [S, D] f32

    # H is small; a static unroll here is equivalent to fori_loop(unroll=True).
    for h in range(H):
        q = qkv[:, h * dk:(h + 1) * dk] * scale                # scale on [S,dk]
        k = qkv[:, D + h * dk:D + (h + 1) * dk]
        v = qkv[:, 2 * D + h * dk:2 * D + (h + 1) * dk]
        # contract dk directly (no explicit transpose of K)
        scores = lax.dot_general(q.astype(jnp.bfloat16), k.astype(jnp.bfloat16),
                                 (((1,), (1,)), ((), ())),
                                 preferred_element_type=jnp.float32)   # [S, S]
        scores = scores + neg_bias
        scores = scores - jnp.max(scores, axis=-1, keepdims=True)
        p = jnp.exp(scores)
        p = p * pl.reciprocal(jnp.sum(p, axis=-1, keepdims=True), approx=True)
        pv = jnp.dot(p.astype(jnp.bfloat16), v.astype(jnp.bfloat16),
                     preferred_element_type=jnp.float32)               # [S, dk]
        # accumulate the O-projection per head: lane-dense [S, D] MXU output
        acc = acc + jnp.dot(pv.astype(wo_ref.dtype),
                            wo_ref[h * dk:(h + 1) * dk, :],
                            preferred_element_type=jnp.float32)

    o_ref[0] = acc.astype(o_ref.dtype)                         # single lane-dense store


def ln_ffn_resid_kernel(x_ref, g_ref, b_ref, w1_ref, b1_ref, w2_ref, b2_ref, o_ref):
    """LayerNorm + position-wise FFN (W1 -> ReLU -> W2) + residual."""
    x = x_ref[...].astype(jnp.float32)                          # [TM, D]
    xn = (_ln_f32(x) * g_ref[...] + b_ref[...]).astype(w1_ref.dtype)
    h = jnp.dot(xn, w1_ref[...], preferred_element_type=jnp.float32) + b1_ref[...]
    h = jnp.maximum(h, 0.0).astype(w2_ref.dtype)                # ReLU
    out = jnp.dot(h, w2_ref[...], preferred_element_type=jnp.float32) + b2_ref[...]
    o_ref[...] = (x + out).astype(o_ref.dtype)                  # residual


# ---------------------------------------------------------------------------
# pallas_call wrappers
# ---------------------------------------------------------------------------
def fused_ln_attn_residual(x, mask3, g, b, w_qkv, b_qkv, wo, bo, H):
    B, S, D = x.shape
    D3 = w_qkv.shape[1]
    dk = D // H
    kern = functools.partial(fused_ln_attn_kernel, H=H, dk=dk,
                             scale=1.0 / math.sqrt(dk))
    return pl.pallas_call(
        kern,
        out_shape=jax.ShapeDtypeStruct((B, S, D), x.dtype),
        grid=(B,),
        in_specs=[
            pl.BlockSpec((1, S, D), lambda bi: (bi, 0, 0)),    # x (activations)
            pl.BlockSpec((1, 1, S), lambda bi: (bi, 0, 0)),    # mask
            pl.BlockSpec((1, D), lambda bi: (0, 0)),           # ln gamma (resident)
            pl.BlockSpec((1, D), lambda bi: (0, 0)),           # ln beta
            pl.BlockSpec((D, D3), lambda bi: (0, 0)),          # packed W_qkv
            pl.BlockSpec((1, D3), lambda bi: (0, 0)),          # packed b_qkv
            pl.BlockSpec((D, D), lambda bi: (0, 0)),           # W_o
            pl.BlockSpec((1, D), lambda bi: (0, 0)),           # b_o
        ],
        out_specs=pl.BlockSpec((1, S, D), lambda bi: (bi, 0, 0)),
        input_output_aliases={0: 0},   # residual buffer reused for the output
        compiler_params=pltpu.CompilerParams(
            dimension_semantics=("parallel",),
            vmem_limit_bytes=_VMEM_LIMIT),
    )(x, mask3, g.reshape(1, D), b.reshape(1, D),
      w_qkv, b_qkv.reshape(1, D3), wo, bo.reshape(1, D))


def ln_ffn_residual(x2, g, b, w1, b1, w2, b2):
    M, D = x2.shape
    DFF = w1.shape[1]
    TM = _choose_tile_m(M)
    Mp = -(-M // TM) * TM
    xp = x2 if Mp == M else jnp.pad(x2, ((0, Mp - M), (0, 0)))
    out = pl.pallas_call(
        ln_ffn_resid_kernel,
        out_shape=jax.ShapeDtypeStruct((Mp, D), x2.dtype),
        grid=(Mp // TM,),
        in_specs=[
            pl.BlockSpec((TM, D), lambda i: (i, 0)),
            pl.BlockSpec((1, D), lambda i: (0, 0)),
            pl.BlockSpec((1, D), lambda i: (0, 0)),
            pl.BlockSpec((D, DFF), lambda i: (0, 0)),
            pl.BlockSpec((1, DFF), lambda i: (0, 0)),
            pl.BlockSpec((DFF, D), lambda i: (0, 0)),
            pl.BlockSpec((1, D), lambda i: (0, 0)),
        ],
        out_specs=pl.BlockSpec((TM, D), lambda i: (i, 0)),
        input_output_aliases={0: 0},   # residual buffer reused for the output
        compiler_params=pltpu.CompilerParams(
            dimension_semantics=("parallel",),
            vmem_limit_bytes=_VMEM_LIMIT),
    )(xp, g.reshape(1, D), b.reshape(1, D), w1, b1.reshape(1, DFF),
      w2, b2.reshape(1, D))
    return out if Mp == M else out[:M]


# ---------------------------------------------------------------------------
# encoder-layer forward (glue in plain JAX; reshapes are free row-major views)
# ---------------------------------------------------------------------------
@functools.partial(jax.jit, static_argnames=("H",))
def encoder_layer_forward(x, mask, p, *, H):
    B, S, D = x.shape
    # --- sublayer 0: x + self_attn(LayerNorm(x), mask)   (single fused kernel)
    x = fused_ln_attn_residual(x, mask.reshape(B, 1, S),
                               p["ln1_g"], p["ln1_b"],
                               p["w_qkv"], p["b_qkv"], p["wo"], p["bo"], H)
    # --- sublayer 1: x + feed_forward(LayerNorm(x))
    y = ln_ffn_residual(x.reshape(B * S, D), p["ln2_g"], p["ln2_b"],
                        p["w1"], p["b1"], p["w2"], p["b2"])
    return y.reshape(B, S, D)


# ---------------------------------------------------------------------------
# deterministic parameter init (bf16 weights, f32 biases / LN params)
# ---------------------------------------------------------------------------
def init_params(key, D, DFF):
    ks = jax.random.split(key, 6)
    s = 0.02
    wq = s * jax.random.normal(ks[0], (D, D), jnp.float32)
    wk = s * jax.random.normal(ks[1], (D, D), jnp.float32)
    wv = s * jax.random.normal(ks[2], (D, D), jnp.float32)
    return {
        "ln1_g": jnp.ones((D,), jnp.float32),
        "ln1_b": jnp.zeros((D,), jnp.float32),
        "ln2_g": jnp.ones((D,), jnp.float32),
        "ln2_b": jnp.zeros((D,), jnp.float32),
        # packed [D, 3D] so LN + Q/K/V is a single fused matmul
        "w_qkv": jnp.concatenate([wq, wk, wv], axis=1).astype(jnp.bfloat16),
        "b_qkv": jnp.zeros((3 * D,), jnp.float32),
        "wo": (s * jax.random.normal(ks[3], (D, D), jnp.float32)).astype(jnp.bfloat16),
        "bo": jnp.zeros((D,), jnp.float32),
        "w1": (s * jax.random.normal(ks[4], (D, DFF), jnp.float32)).astype(jnp.bfloat16),
        "b1": jnp.zeros((DFF,), jnp.float32),
        "w2": (s * jax.random.normal(ks[5], (DFF, D), jnp.float32)).astype(jnp.bfloat16),
        "b2": jnp.zeros((D,), jnp.float32),
    }


# ---------------------------------------------------------------------------
if __name__ == "__main__":
    B, S, D, H, DFF = 2, 8, 32, 4, 64

    key = jax.random.PRNGKey(0)
    kp, kx = jax.random.split(key)
    params = init_params(kp, D, DFF)

    x = jax.random.normal(kx, (B, S, D), jnp.float32).astype(jnp.bfloat16)
    lengths = jnp.array([S, 5])
    mask = (jnp.arange(S)[None, :] < lengths[:, None]).astype(jnp.float32)  # [B, S]

    out = encoder_layer_forward(x, mask, params, H=H)
    out = jax.block_until_ready(out)
    assert out.shape == (B, S, D) and out.dtype == jnp.bfloat16
    assert bool(jnp.all(jnp.isfinite(out.astype(jnp.float32))))
    print("KERNEL_OK")
</pallas_src>

<mosaic_0001>
module attributes {stable_mosaic.version = 11 : i64} {
  func.func @ln_ffn_resid_kernel(%arg0: i32, %arg1: memref<8x32xbf16, #tpu.memory_space<vmem>>, %arg2: memref<1x32xf32, #tpu.memory_space<vmem>>, %arg3: memref<1x32xf32, #tpu.memory_space<vmem>>, %arg4: memref<32x64xbf16, #tpu.memory_space<vmem>>, %arg5: memref<1x64xf32, #tpu.memory_space<vmem>>, %arg6: memref<64x32xbf16, #tpu.memory_space<vmem>>, %arg7: memref<1x32xf32, #tpu.memory_space<vmem>>, %arg8: memref<8x32xbf16, #tpu.memory_space<vmem>>) attributes {dimension_semantics = [#tpu.dimension_semantics<parallel>], iteration_bounds = array<i64: 2>, scalar_prefetch = 0 : i64, scratch_operands = 0 : i64, tpu.core_type = #tpu.core_type<tc>, window_params = [{transform_indices = @transform_0, window_bounds = array<i64: 8, 32>}, {pipeline_mode = #tpu.pipeline_mode<synchronous>, transform_indices = @transform_1, window_bounds = array<i64: 1, 32>}, {pipeline_mode = #tpu.pipeline_mode<synchronous>, transform_indices = @transform_2, window_bounds = array<i64: 1, 32>}, {pipeline_mode = #tpu.pipeline_mode<synchronous>, transform_indices = @transform_3, window_bounds = array<i64: 32, 64>}, {pipeline_mode = #tpu.pipeline_mode<synchronous>, transform_indices = @transform_4, window_bounds = array<i64: 1, 64>}, {pipeline_mode = #tpu.pipeline_mode<synchronous>, transform_indices = @transform_5, window_bounds = array<i64: 64, 32>}, {pipeline_mode = #tpu.pipeline_mode<synchronous>, transform_indices = @transform_6, window_bounds = array<i64: 1, 32>}, {transform_indices = @transform_7, window_bounds = array<i64: 8, 32>}]} {
    %c0 = arith.constant 0 : index
    %c0_0 = arith.constant 0 : index
    %0 = vector.load %arg1[%c0, %c0_0] : memref<8x32xbf16, #tpu.memory_space<vmem>>, vector<8x32xbf16>
    %1 = arith.extf %0 : vector<8x32xbf16> to vector<8x32xf32>
    %cst = arith.constant dense<0.000000e+00> : vector<8xf32>
    %2 = vector.multi_reduction <add>, %1, %cst [1] : vector<8x32xf32> to vector<8xf32>
    %3 = vector.shape_cast %2 : vector<8xf32> to vector<8x1xf32>
    %cst_1 = arith.constant 3.200000e+01 : f32
    %4 = vector.broadcast %cst_1 : f32 to vector<8x1xf32>
    %5 = arith.divf %3, %4 : vector<8x1xf32>
    %6 = vector.broadcast %5 : vector<8x1xf32> to vector<8x32xf32>
    %7 = arith.subf %1, %6 : vector<8x32xf32>
    %8 = arith.mulf %7, %7 : vector<8x32xf32>
    %cst_2 = arith.constant dense<0.000000e+00> : vector<8xf32>
    %9 = vector.multi_reduction <add>, %8, %cst_2 [1] : vector<8x32xf32> to vector<8xf32>
    %10 = vector.shape_cast %9 : vector<8xf32> to vector<8x1xf32>
    %cst_3 = arith.constant 3.200000e+01 : f32
    %11 = vector.broadcast %cst_3 : f32 to vector<8x1xf32>
    %12 = arith.divf %10, %11 : vector<8x1xf32>
    %cst_4 = arith.constant 9.99999974E-6 : f32
    %13 = vector.broadcast %cst_4 : f32 to vector<8x1xf32>
    %14 = arith.addf %12, %13 : vector<8x1xf32>
    %15 = math.rsqrt %14 : vector<8x1xf32>
    %16 = vector.broadcast %15 : vector<8x1xf32> to vector<8x32xf32>
    %17 = arith.mulf %7, %16 : vector<8x32xf32>
    %c0_5 = arith.constant 0 : index
    %c0_6 = arith.constant 0 : index
    %18 = vector.load %arg2[%c0_5, %c0_6] : memref<1x32xf32, #tpu.memory_space<vmem>>, vector<1x32xf32>
    %19 = vector.broadcast %18 : vector<1x32xf32> to vector<8x32xf32>
    %20 = arith.mulf %17, %19 : vector<8x32xf32>
    %c0_7 = arith.constant 0 : index
    %c0_8 = arith.constant 0 : index
    %21 = vector.load %arg3[%c0_7, %c0_8] : memref<1x32xf32, #tpu.memory_space<vmem>>, vector<1x32xf32>
    %22 = vector.broadcast %21 : vector<1x32xf32> to vector<8x32xf32>
    %23 = arith.addf %20, %22 : vector<8x32xf32>
    %24 = arith.truncf %23 : vector<8x32xf32> to vector<8x32xbf16>
    %c0_9 = arith.constant 0 : index
    %c0_10 = arith.constant 0 : index
    %25 = vector.load %arg4[%c0_9, %c0_10] : memref<32x64xbf16, #tpu.memory_space<vmem>>, vector<32x64xbf16>
    %cst_11 = arith.constant dense<0.000000e+00> : vector<8x64xf32>
    %26 = tpu.matmul %24, %25, %cst_11 {dimension_numbers = #tpu.dot_dimension_numbers<[1], [0], [0], [1], [0, 0, 1, 1], [], []>} : vector<8x32xbf16>, vector<32x64xbf16>, vector<8x64xf32> -> vector<8x64xf32>
    %c0_12 = arith.constant 0 : index
    %c0_13 = arith.constant 0 : index
    %27 = vector.load %arg5[%c0_12, %c0_13] : memref<1x64xf32, #tpu.memory_space<vmem>>, vector<1x64xf32>
    %28 = vector.broadcast %27 : vector<1x64xf32> to vector<8x64xf32>
    %29 = arith.addf %26, %28 : vector<8x64xf32>
    %cst_14 = arith.constant 0.000000e+00 : f32
    %30 = vector.broadcast %cst_14 : f32 to vector<8x64xf32>
    %31 = arith.maximumf %29, %30 : vector<8x64xf32>
    %32 = arith.truncf %31 : vector<8x64xf32> to vector<8x64xbf16>
    %c0_15 = arith.constant 0 : index
    %c0_16 = arith.constant 0 : index
    %33 = vector.load %arg6[%c0_15, %c0_16] : memref<64x32xbf16, #tpu.memory_space<vmem>>, vector<64x32xbf16>
    %cst_17 = arith.constant dense<0.000000e+00> : vector<8x32xf32>
    %34 = tpu.matmul %32, %33, %cst_17 {dimension_numbers = #tpu.dot_dimension_numbers<[1], [0], [0], [1], [0, 0, 1, 1], [], []>} : vector<8x64xbf16>, vector<64x32xbf16>, vector<8x32xf32> -> vector<8x32xf32>
    %c0_18 = arith.constant 0 : index
    %c0_19 = arith.constant 0 : index
    %35 = vector.load %arg7[%c0_18, %c0_19] : memref<1x32xf32, #tpu.memory_space<vmem>>, vector<1x32xf32>
    %36 = vector.broadcast %35 : vector<1x32xf32> to vector<8x32xf32>
    %37 = arith.addf %34, %36 : vector<8x32xf32>
    %38 = arith.addf %1, %37 : vector<8x32xf32>
    %39 = arith.truncf %38 : vector<8x32xf32> to vector<8x32xbf16>
    %c0_20 = arith.constant 0 : index
    %c0_21 = arith.constant 0 : index
    %40 = vector.load %arg8[%c0_20, %c0_21] : memref<8x32xbf16, #tpu.memory_space<vmem>>, vector<8x32xbf16>
    tpu.vector_store %arg8[%c0_20, %c0_21], %39 {strides = array<i32>} : memref<8x32xbf16, #tpu.memory_space<vmem>>, vector<8x32xbf16>,
    return
  }
  func.func @transform_0(%arg0: i32) -> (i32, i32) {
    %c0_i32 = arith.constant 0 : i32
    %c0_i32_0 = arith.constant 0 : i32
    return %arg0, %c0_i32 : i32, i32
  }
  func.func @transform_1(%arg0: i32) -> (i32, i32) {
    %c0_i32 = arith.constant 0 : i32
    %c0_i32_0 = arith.constant 0 : i32
    %c0_i32_1 = arith.constant 0 : i32
    return %c0_i32, %c0_i32_0 : i32, i32
  }
  func.func @transform_2(%arg0: i32) -> (i32, i32) {
    %c0_i32 = arith.constant 0 : i32
    %c0_i32_0 = arith.constant 0 : i32
    %c0_i32_1 = arith.constant 0 : i32
    return %c0_i32, %c0_i32_0 : i32, i32
  }
  func.func @transform_3(%arg0: i32) -> (i32, i32) {
    %c0_i32 = arith.constant 0 : i32
    %c0_i32_0 = arith.constant 0 : i32
    %c0_i32_1 = arith.constant 0 : i32
    return %c0_i32, %c0_i32_0 : i32, i32
  }
  func.func @transform_4(%arg0: i32) -> (i32, i32) {
    %c0_i32 = arith.constant 0 : i32
    %c0_i32_0 = arith.constant 0 : i32
    %c0_i32_1 = arith.constant 0 : i32
    return %c0_i32, %c0_i32_0 : i32, i32
  }
  func.func @transform_5(%arg0: i32) -> (i32, i32) {
    %c0_i32 = arith.constant 0 : i32
    %c0_i32_0 = arith.constant 0 : i32
    %c0_i32_1 = arith.constant 0 : i32
    return %c0_i32, %c0_i32_0 : i32, i32
  }
  func.func @transform_6(%arg0: i32) -> (i32, i32) {
    %c0_i32 = arith.constant 0 : i32
    %c0_i32_0 = arith.constant 0 : i32
    %c0_i32_1 = arith.constant 0 : i32
    return %c0_i32, %c0_i32_0 : i32, i32
  }
  func.func @transform_7(%arg0: i32) -> (i32, i32) {
    %c0_i32 = arith.constant 0 : i32
    %c0_i32_0 = arith.constant 0 : i32
    return %arg0, %c0_i32 : i32, i32
  }
}

module attributes {stable_mosaic.version = 11 : i64} {
  func.func @fused_ln_attn_kernel(%arg0: i32, %arg1: memref<1x8x32xbf16, #tpu.memory_space<vmem>>, %arg2: memref<1x1x8xf32, #tpu.memory_space<vmem>>, %arg3: memref<1x32xf32, #tpu.memory_space<vmem>>, %arg4: memref<1x32xf32, #tpu.memory_space<vmem>>, %arg5: memref<32x96xbf16, #tpu.memory_space<vmem>>, %arg6: memref<1x96xf32, #tpu.memory_space<vmem>>, %arg7: memref<32x32xbf16, #tpu.memory_space<vmem>>, %arg8: memref<1x32xf32, #tpu.memory_space<vmem>>, %arg9: memref<1x8x32xbf16, #tpu.memory_space<vmem>>) attributes {dimension_semantics = [#tpu.dimension_semantics<parallel>], iteration_bounds = array<i64: 2>, scalar_prefetch = 0 : i64, scratch_operands = 0 : i64, tpu.core_type = #tpu.core_type<tc>, window_params = [{transform_indices = @transform_0, window_bounds = array<i64: 1, 8, 32>}, {transform_indices = @transform_1, window_bounds = array<i64: 1, 1, 8>}, {pipeline_mode = #tpu.pipeline_mode<synchronous>, transform_indices = @transform_2, window_bounds = array<i64: 1, 32>}, {pipeline_mode = #tpu.pipeline_mode<synchronous>, transform_indices = @transform_3, window_bounds = array<i64: 1, 32>}, {pipeline_mode = #tpu.pipeline_mode<synchronous>, transform_indices = @transform_4, window_bounds = array<i64: 32, 96>}, {pipeline_mode = #tpu.pipeline_mode<synchronous>, transform_indices = @transform_5, window_bounds = array<i64: 1, 96>}, {pipeline_mode = #tpu.pipeline_mode<synchronous>, transform_indices = @transform_6, window_bounds = array<i64: 32, 32>}, {pipeline_mode = #tpu.pipeline_mode<synchronous>, transform_indices = @transform_7, window_bounds = array<i64: 1, 32>}, {transform_indices = @transform_8, window_bounds = array<i64: 1, 8, 32>}]} {
    %c0 = arith.constant 0 : index
    %c0_0 = arith.constant 0 : index
    %c0_1 = arith.constant 0 : index
    %0 = vector.load %arg1[%c0, %c0_0, %c0_1] : memref<1x8x32xbf16, #tpu.memory_space<vmem>>, vector<1x8x32xbf16>
    %1 = vector.shape_cast %0 : vector<1x8x32xbf16> to vector<8x32xbf16>
    %2 = arith.extf %1 : vector<8x32xbf16> to vector<8x32xf32>
    %cst = arith.constant dense<0.000000e+00> : vector<8xf32>
    %3 = vector.multi_reduction <add>, %2, %cst [1] : vector<8x32xf32> to vector<8xf32>
    %4 = vector.shape_cast %3 : vector<8xf32> to vector<8x1xf32>
    %cst_2 = arith.constant 3.200000e+01 : f32
    %5 = vector.broadcast %cst_2 : f32 to vector<8x1xf32>
    %6 = arith.divf %4, %5 : vector<8x1xf32>
    %7 = vector.broadcast %6 : vector<8x1xf32> to vector<8x32xf32>
    %8 = arith.subf %2, %7 : vector<8x32xf32>
    %9 = arith.mulf %8, %8 : vector<8x32xf32>
    %cst_3 = arith.constant dense<0.000000e+00> : vector<8xf32>
    %10 = vector.multi_reduction <add>, %9, %cst_3 [1] : vector<8x32xf32> to vector<8xf32>
    %11 = vector.shape_cast %10 : vector<8xf32> to vector<8x1xf32>
    %cst_4 = arith.constant 3.200000e+01 : f32
    %12 = vector.broadcast %cst_4 : f32 to vector<8x1xf32>
    %13 = arith.divf %11, %12 : vector<8x1xf32>
    %cst_5 = arith.constant 9.99999974E-6 : f32
    %14 = vector.broadcast %cst_5 : f32 to vector<8x1xf32>
    %15 = arith.addf %13, %14 : vector<8x1xf32>
    %16 = math.rsqrt %15 : vector<8x1xf32>
    %17 = vector.broadcast %16 : vector<8x1xf32> to vector<8x32xf32>
    %18 = arith.mulf %8, %17 : vector<8x32xf32>
    %c0_6 = arith.constant 0 : index
    %c0_7 = arith.constant 0 : index
    %19 = vector.load %arg3[%c0_6, %c0_7] : memref<1x32xf32, #tpu.memory_space<vmem>>, vector<1x32xf32>
    %20 = vector.broadcast %19 : vector<1x32xf32> to vector<8x32xf32>
    %21 = arith.mulf %18, %20 : vector<8x32xf32>
    %c0_8 = arith.constant 0 : index
    %c0_9 = arith.constant 0 : index
    %22 = vector.load %arg4[%c0_8, %c0_9] : memref<1x32xf32, #tpu.memory_space<vmem>>, vector<1x32xf32>
    %23 = vector.broadcast %22 : vector<1x32xf32> to vector<8x32xf32>
    %24 = arith.addf %21, %23 : vector<8x32xf32>
    %25 = arith.truncf %24 : vector<8x32xf32> to vector<8x32xbf16>
    %c0_10 = arith.constant 0 : index
    %c0_11 = arith.constant 0 : index
    %26 = vector.load %arg5[%c0_10, %c0_11] : memref<32x96xbf16, #tpu.memory_space<vmem>>, vector<32x96xbf16>
    %cst_12 = arith.constant dense<0.000000e+00> : vector<8x96xf32>
    %27 = tpu.matmul %25, %26, %cst_12 {dimension_numbers = #tpu.dot_dimension_numbers<[1], [0], [0], [1], [0, 0, 1, 1], [], []>} : vector<8x32xbf16>, vector<32x96xbf16>, vector<8x96xf32> -> vector<8x96xf32>
    %c0_13 = arith.constant 0 : index
    %c0_14 = arith.constant 0 : index
    %28 = vector.load %arg6[%c0_13, %c0_14] : memref<1x96xf32, #tpu.memory_space<vmem>>, vector<1x96xf32>
    %29 = vector.broadcast %28 : vector<1x96xf32> to vector<8x96xf32>
    %30 = arith.addf %27, %29 : vector<8x96xf32>
    %c0_15 = arith.constant 0 : index
    %c0_16 = arith.constant 0 : index
    %c0_17 = arith.constant 0 : index
    %31 = vector.load %arg2[%c0_15, %c0_16, %c0_17] : memref<1x1x8xf32, #tpu.memory_space<vmem>>, vector<1x1x8xf32>
    %32 = vector.shape_cast %31 : vector<1x1x8xf32> to vector<1x8xf32>
    %cst_18 = arith.constant 0.000000e+00 : f32
    %33 = vector.broadcast %cst_18 : f32 to vector<1x8xf32>
    %34 = arith.cmpf oeq, %32, %33 : vector<1x8xf32>
    %cst_19 = arith.constant -1.000000e+09 : f32
    %cst_20 = arith.constant 0.000000e+00 : f32
    %35 = vector.broadcast %cst_19 : f32 to vector<1x8xf32>
    %36 = vector.broadcast %cst_20 : f32 to vector<1x8xf32>
    %37 = arith.select %34, %35, %36 : vector<1x8xi1>, vector<1x8xf32>
    %c0_21 = arith.constant 0 : index
    %c0_22 = arith.constant 0 : index
    %38 = vector.load %arg8[%c0_21, %c0_22] : memref<1x32xf32, #tpu.memory_space<vmem>>, vector<1x32xf32>
    %39 = vector.broadcast %38 : vector<1x32xf32> to vector<8x32xf32>
    %40 = arith.addf %2, %39 : vector<8x32xf32>
    %41 = vector.extract_strided_slice %30 {offsets = [0, 0], sizes = [8, 8], strides = [1, 1]} : vector<8x96xf32> to vector<8x8xf32>
    %cst_23 = arith.constant 0.353553385 : f32
    %42 = vector.broadcast %cst_23 : f32 to vector<8x8xf32>
    %43 = arith.mulf %41, %42 : vector<8x8xf32>
    %44 = vector.extract_strided_slice %30 {offsets = [0, 32], sizes = [8, 8], strides = [1, 1]} : vector<8x96xf32> to vector<8x8xf32>
    %45 = vector.extract_strided_slice %30 {offsets = [0, 64], sizes = [8, 8], strides = [1, 1]} : vector<8x96xf32> to vector<8x8xf32>
    %46 = arith.truncf %43 : vector<8x8xf32> to vector<8x8xbf16>
    %47 = arith.truncf %44 : vector<8x8xf32> to vector<8x8xbf16>
    %cst_24 = arith.constant dense<0.000000e+00> : vector<8x8xf32>
    %48 = tpu.matmul %46, %47, %cst_24 {dimension_numbers = #tpu.dot_dimension_numbers<[1], [1], [0], [0], [0, 0, 1, 0], [], []>} : vector<8x8xbf16>, vector<8x8xbf16>, vector<8x8xf32> -> vector<8x8xf32>
    %49 = vector.broadcast %37 : vector<1x8xf32> to vector<8x8xf32>
    %50 = arith.addf %48, %49 : vector<8x8xf32>
    %cst_25 = arith.constant dense<0xFF800000> : vector<8xf32>
    %51 = vector.multi_reduction <maximumf>, %50, %cst_25 [1] : vector<8x8xf32> to vector<8xf32>
    %52 = vector.shape_cast %51 : vector<8xf32> to vector<8x1xf32>
    %53 = vector.broadcast %52 : vector<8x1xf32> to vector<8x8xf32>
    %54 = arith.subf %50, %53 : vector<8x8xf32>
    %55 = math.exp %54 : vector<8x8xf32>
    %cst_26 = arith.constant dense<0.000000e+00> : vector<8xf32>
    %56 = vector.multi_reduction <add>, %55, %cst_26 [1] : vector<8x8xf32> to vector<8xf32>
    %57 = vector.shape_cast %56 : vector<8xf32> to vector<8x1xf32>
    %58 = tpu.reciprocal %57 {approx = true} : vector<8x1xf32> -> vector<8x1xf32>
    %59 = vector.broadcast %58 : vector<8x1xf32> to vector<8x8xf32>
    %60 = arith.mulf %55, %59 : vector<8x8xf32>
    %61 = arith.truncf %60 : vector<8x8xf32> to vector<8x8xbf16>
    %62 = arith.truncf %45 : vector<8x8xf32> to vector<8x8xbf16>
    %cst_27 = arith.constant dense<0.000000e+00> : vector<8x8xf32>
    %63 = tpu.matmul %61, %62, %cst_27 {dimension_numbers = #tpu.dot_dimension_numbers<[1], [0], [0], [1], [0, 0, 1, 1], [], []>} : vector<8x8xbf16>, vector<8x8xbf16>, vector<8x8xf32> -> vector<8x8xf32>
    %64 = arith.truncf %63 : vector<8x8xf32> to vector<8x8xbf16>
    %c0_28 = arith.constant 0 : index
    %c0_29 = arith.constant 0 : index
    %65 = vector.load %arg7[%c0_28, %c0_29] : memref<32x32xbf16, #tpu.memory_space<vmem>>, vector<8x32xbf16>
    %cst_30 = arith.constant dense<0.000000e+00> : vector<8x32xf32>
    %66 = tpu.matmul %64, %65, %cst_30 {dimension_numbers = #tpu.dot_dimension_numbers<[1], [0], [0], [1], [0, 0, 1, 1], [], []>} : vector<8x8xbf16>, vector<8x32xbf16>, vector<8x32xf32> -> vector<8x32xf32>
    %67 = arith.addf %40, %66 : vector<8x32xf32>
    %68 = vector.extract_strided_slice %30 {offsets = [0, 8], sizes = [8, 8], strides = [1, 1]} : vector<8x96xf32> to vector<8x8xf32>
    %cst_31 = arith.constant 0.353553385 : f32
    %69 = vector.broadcast %cst_31 : f32 to vector<8x8xf32>
    %70 = arith.mulf %68, %69 : vector<8x8xf32>
    %71 = vector.extract_strided_slice %30 {offsets = [0, 40], sizes = [8, 8], strides = [1, 1]} : vector<8x96xf32> to vector<8x8xf32>
    %72 = vector.extract_strided_slice %30 {offsets = [0, 72], sizes = [8, 8], strides = [1, 1]} : vector<8x96xf32> to vector<8x8xf32>
    %73 = arith.truncf %70 : vector<8x8xf32> to vector<8x8xbf16>
    %74 = arith.truncf %71 : vector<8x8xf32> to vector<8x8xbf16>
    %cst_32 = arith.constant dense<0.000000e+00> : vector<8x8xf32>
    %75 = tpu.matmul %73, %74, %cst_32 {dimension_numbers = #tpu.dot_dimension_numbers<[1], [1], [0], [0], [0, 0, 1, 0], [], []>} : vector<8x8xbf16>, vector<8x8xbf16>, vector<8x8xf32> -> vector<8x8xf32>
    %76 = vector.broadcast %37 : vector<1x8xf32> to vector<8x8xf32>
    %77 = arith.addf %75, %76 : vector<8x8xf32>
    %cst_33 = arith.constant dense<0xFF800000> : vector<8xf32>
    %78 = vector.multi_reduction <maximumf>, %77, %cst_33 [1] : vector<8x8xf32> to vector<8xf32>
    %79 = vector.shape_cast %78 : vector<8xf32> to vector<8x1xf32>
    %80 = vector.broadcast %79 : vector<8x1xf32> to vector<8x8xf32>
    %81 = arith.subf %77, %80 : vector<8x8xf32>
    %82 = math.exp %81 : vector<8x8xf32>
    %cst_34 = arith.constant dense<0.000000e+00> : vector<8xf32>
    %83 = vector.multi_reduction <add>, %82, %cst_34 [1] : vector<8x8xf32> to vector<8xf32>
    %84 = vector.shape_cast %83 : vector<8xf32> to vector<8x1xf32>
    %85 = tpu.reciprocal %84 {approx = true} : vector<8x1xf32> -> vector<8x1xf32>
    %86 = vector.broadcast %85 : vector<8x1xf32> to vector<8x8xf32>
    %87 = arith.mulf %82, %86 : vector<8x8xf32>
    %88 = arith.truncf %87 : vector<8x8xf32> to vector<8x8xbf16>
    %89 = arith.truncf %72 : vector<8x8xf32> to vector<8x8xbf16>
    %cst_35 = arith.constant dense<0.000000e+00> : vector<8x8xf32>
    %90 = tpu.matmul %88, %89, %cst_35 {dimension_numbers = #tpu.dot_dimension_numbers<[1], [0], [0], [1], [0, 0, 1, 1], [], []>} : vector<8x8xbf16>, vector<8x8xbf16>, vector<8x8xf32> -> vector<8x8xf32>
    %91 = arith.truncf %90 : vector<8x8xf32> to vector<8x8xbf16>
    %c8 = arith.constant 8 : index
    %c0_36 = arith.constant 0 : index
    %92 = vector.load %arg7[%c8, %c0_36] : memref<32x32xbf16, #tpu.memory_space<vmem>>, vector<8x32xbf16>
    %cst_37 = arith.constant dense<0.000000e+00> : vector<8x32xf32>
    %93 = tpu.matmul %91, %92, %cst_37 {dimension_numbers = #tpu.dot_dimension_numbers<[1], [0], [0], [1], [0, 0, 1, 1], [], []>} : vector<8x8xbf16>, vector<8x32xbf16>, vector<8x32xf32> -> vector<8x32xf32>
    %94 = arith.addf %67, %93 : vector<8x32xf32>
    %95 = vector.extract_strided_slice %30 {offsets = [0, 16], sizes = [8, 8], strides = [1, 1]} : vector<8x96xf32> to vector<8x8xf32>
    %cst_38 = arith.constant 0.353553385 : f32
    %96 = vector.broadcast %cst_38 : f32 to vector<8x8xf32>
    %97 = arith.mulf %95, %96 : vector<8x8xf32>
    %98 = vector.extract_strided_slice %30 {offsets = [0, 48], sizes = [8, 8], strides = [1, 1]} : vector<8x96xf32> to vector<8x8xf32>
    %99 = vector.extract_strided_slice %30 {offsets = [0, 80], sizes = [8, 8], strides = [1, 1]} : vector<8x96xf32> to vector<8x8xf32>
    %100 = arith.truncf %97 : vector<8x8xf32> to vector<8x8xbf16>
    %101 = arith.truncf %98 : vector<8x8xf32> to vector<8x8xbf16>
    %cst_39 = arith.constant dense<0.000000e+00> : vector<8x8xf32>
    %102 = tpu.matmul %100, %101, %cst_39 {dimension_numbers = #tpu.dot_dimension_numbers<[1], [1], [0], [0], [0, 0, 1, 0], [], []>} : vector<8x8xbf16>, vector<8x8xbf16>, vector<8x8xf32> -> vector<8x8xf32>
    %103 = vector.broadcast %37 : vector<1x8xf32> to vector<8x8xf32>
    %104 = arith.addf %102, %103 : vector<8x8xf32>
    %cst_40 = arith.constant dense<0xFF800000> : vector<8xf32>
    %105 = vector.multi_reduction <maximumf>, %104, %cst_40 [1] : vector<8x8xf32> to vector<8xf32>
    %106 = vector.shape_cast %105 : vector<8xf32> to vector<8x1xf32>
    %107 = vector.broadcast %106 : vector<8x1xf32> to vector<8x8xf32>
    %108 = arith.subf %104, %107 : vector<8x8xf32>
    %109 = math.exp %108 : vector<8x8xf32>
    %cst_41 = arith.constant dense<0.000000e+00> : vector<8xf32>
    %110 = vector.multi_reduction <add>, %109, %cst_41 [1] : vector<8x8xf32> to vector<8xf32>
    %111 = vector.shape_cast %110 : vector<8xf32> to vector<8x1xf32>
    %112 = tpu.reciprocal %111 {approx = true} : vector<8x1xf32> -> vector<8x1xf32>
    %113 = vector.broadcast %112 : vector<8x1xf32> to vector<8x8xf32>
    %114 = arith.mulf %109, %113 : vector<8x8xf32>
    %115 = arith.truncf %114 : vector<8x8xf32> to vector<8x8xbf16>
    %116 = arith.truncf %99 : vector<8x8xf32> to vector<8x8xbf16>
    %cst_42 = arith.constant dense<0.000000e+00> : vector<8x8xf32>
    %117 = tpu.matmul %115, %116, %cst_42 {dimension_numbers = #tpu.dot_dimension_numbers<[1], [0], [0], [1], [0, 0, 1, 1], [], []>} : vector<8x8xbf16>, vector<8x8xbf16>, vector<8x8xf32> -> vector<8x8xf32>
    %118 = arith.truncf %117 : vector<8x8xf32> to vector<8x8xbf16>
    %c16 = arith.constant 16 : index
    %c0_43 = arith.constant 0 : index
    %119 = vector.load %arg7[%c16, %c0_43] : memref<32x32xbf16, #tpu.memory_space<vmem>>, vector<8x32xbf16>
    %cst_44 = arith.constant dense<0.000000e+00> : vector<8x32xf32>
    %120 = tpu.matmul %118, %119, %cst_44 {dimension_numbers = #tpu.dot_dimension_numbers<[1], [0], [0], [1], [0, 0, 1, 1], [], []>} : vector<8x8xbf16>, vector<8x32xbf16>, vector<8x32xf32> -> vector<8x32xf32>
    %121 = arith.addf %94, %120 : vector<8x32xf32>
    %122 = vector.extract_strided_slice %30 {offsets = [0, 24], sizes = [8, 8], strides = [1, 1]} : vector<8x96xf32> to vector<8x8xf32>
    %cst_45 = arith.constant 0.353553385 : f32
    %123 = vector.broadcast %cst_45 : f32 to vector<8x8xf32>
    %124 = arith.mulf %122, %123 : vector<8x8xf32>
    %125 = vector.extract_strided_slice %30 {offsets = [0, 56], sizes = [8, 8], strides = [1, 1]} : vector<8x96xf32> to vector<8x8xf32>
    %126 = vector.extract_strided_slice %30 {offsets = [0, 88], sizes = [8, 8], strides = [1, 1]} : vector<8x96xf32> to vector<8x8xf32>
    %127 = arith.truncf %124 : vector<8x8xf32> to vector<8x8xbf16>
    %128 = arith.truncf %125 : vector<8x8xf32> to vector<8x8xbf16>
    %cst_46 = arith.constant dense<0.000000e+00> : vector<8x8xf32>
    %129 = tpu.matmul %127, %128, %cst_46 {dimension_numbers = #tpu.dot_dimension_numbers<[1], [1], [0], [0], [0, 0, 1, 0], [], []>} : vector<8x8xbf16>, vector<8x8xbf16>, vector<8x8xf32> -> vector<8x8xf32>
    %130 = vector.broadcast %37 : vector<1x8xf32> to vector<8x8xf32>
    %131 = arith.addf %129, %130 : vector<8x8xf32>
    %cst_47 = arith.constant dense<0xFF800000> : vector<8xf32>
    %132 = vector.multi_reduction <maximumf>, %131, %cst_47 [1] : vector<8x8xf32> to vector<8xf32>
    %133 = vector.shape_cast %132 : vector<8xf32> to vector<8x1xf32>
    %134 = vector.broadcast %133 : vector<8x1xf32> to vector<8x8xf32>
    %135 = arith.subf %131, %134 : vector<8x8xf32>
    %136 = math.exp %135 : vector<8x8xf32>
    %cst_48 = arith.constant dense<0.000000e+00> : vector<8xf32>
    %137 = vector.multi_reduction <add>, %136, %cst_48 [1] : vector<8x8xf32> to vector<8xf32>
    %138 = vector.shape_cast %137 : vector<8xf32> to vector<8x1xf32>
    %139 = tpu.reciprocal %138 {approx = true} : vector<8x1xf32> -> vector<8x1xf32>
    %140 = vector.broadcast %139 : vector<8x1xf32> to vector<8x8xf32>
    %141 = arith.mulf %136, %140 : vector<8x8xf32>
    %142 = arith.truncf %141 : vector<8x8xf32> to vector<8x8xbf16>
    %143 = arith.truncf %126 : vector<8x8xf32> to vector<8x8xbf16>
    %cst_49 = arith.constant dense<0.000000e+00> : vector<8x8xf32>
    %144 = tpu.matmul %142, %143, %cst_49 {dimension_numbers = #tpu.dot_dimension_numbers<[1], [0], [0], [1], [0, 0, 1, 1], [], []>} : vector<8x8xbf16>, vector<8x8xbf16>, vector<8x8xf32> -> vector<8x8xf32>
    %145 = arith.truncf %144 : vector<8x8xf32> to vector<8x8xbf16>
    %c24 = arith.constant 24 : index
    %c0_50 = arith.constant 0 : index
    %146 = vector.load %arg7[%c24, %c0_50] : memref<32x32xbf16, #tpu.memory_space<vmem>>, vector<8x32xbf16>
    %cst_51 = arith.constant dense<0.000000e+00> : vector<8x32xf32>
    %147 = tpu.matmul %145, %146, %cst_51 {dimension_numbers = #tpu.dot_dimension_numbers<[1], [0], [0], [1], [0, 0, 1, 1], [], []>} : vector<8x8xbf16>, vector<8x32xbf16>, vector<8x32xf32> -> vector<8x32xf32>
    %148 = arith.addf %121, %147 : vector<8x32xf32>
    %149 = arith.truncf %148 : vector<8x32xf32> to vector<8x32xbf16>
    %c0_52 = arith.constant 0 : index
    %c0_53 = arith.constant 0 : index
    %c0_54 = arith.constant 0 : index
    %150 = vector.load %arg9[%c0_52, %c0_53, %c0_54] : memref<1x8x32xbf16, #tpu.memory_space<vmem>>, vector<1x8x32xbf16>
    %151 = vector.shape_cast %150 : vector<1x8x32xbf16> to vector<8x32xbf16>
    %152 = vector.shape_cast %149 : vector<8x32xbf16> to vector<1x8x32xbf16>
    tpu.vector_store %arg9[%c0_52, %c0_53, %c0_54], %152 {strides = array<i32>} : memref<1x8x32xbf16, #tpu.memory_space<vmem>>, vector<1x8x32xbf16>,
    return
  }
  func.func @transform_0(%arg0: i32) -> (i32, i32, i32) {
    %c0_i32 = arith.constant 0 : i32
    %c0_i32_0 = arith.constant 0 : i32
    %c0_i32_1 = arith.constant 0 : i32
    return %arg0, %c0_i32, %c0_i32_0 : i32, i32, i32
  }
  func.func @transform_1(%arg0: i32) -> (i32, i32, i32) {
    %c0_i32 = arith.constant 0 : i32
    %c0_i32_0 = arith.constant 0 : i32
    %c0_i32_1 = arith.constant 0 : i32
    return %arg0, %c0_i32, %c0_i32_0 : i32, i32, i32
  }
  func.func @transform_2(%arg0: i32) -> (i32, i32) {
    %c0_i32 = arith.constant 0 : i32
    %c0_i32_0 = arith.constant 0 : i32
    %c0_i32_1 = arith.constant 0 : i32
    return %c0_i32, %c0_i32_0 : i32, i32
  }
  func.func @transform_3(%arg0: i32) -> (i32, i32) {
    %c0_i32 = arith.constant 0 : i32
    %c0_i32_0 = arith.constant 0 : i32
    %c0_i32_1 = arith.constant 0 : i32
    return %c0_i32, %c0_i32_0 : i32, i32
  }
  func.func @transform_4(%arg0: i32) -> (i32, i32) {
    %c0_i32 = arith.constant 0 : i32
    %c0_i32_0 = arith.constant 0 : i32
    %c0_i32_1 = arith.constant 0 : i32
    return %c0_i32, %c0_i32_0 : i32, i32
  }
  func.func @transform_5(%arg0: i32) -> (i32, i32) {
    %c0_i32 = arith.constant 0 : i32
    %c0_i32_0 = arith.constant 0 : i32
    %c0_i32_1 = arith.constant 0 : i32
    return %c0_i32, %c0_i32_0 : i32, i32
  }
  func.func @transform_6(%arg0: i32) -> (i32, i32) {
    %c0_i32 = arith.constant 0 : i32
    %c0_i32_0 = arith.constant 0 : i32
    %c0_i32_1 = arith.constant 0 : i32
    return %c0_i32, %c0_i32_0 : i32, i32
  }
  func.func @transform_7(%arg0: i32) -> (i32, i32) {
    %c0_i32 = arith.constant 0 : i32
    %c0_i32_0 = arith.constant 0 : i32
    %c0_i32_1 = arith.constant 0 : i32
    return %c0_i32, %c0_i32_0 : i32, i32
  }
  func.func @transform_8(%arg0: i32) -> (i32, i32, i32) {
    %c0_i32 = arith.constant 0 : i32
    %c0_i32_0 = arith.constant 0 : i32
    %c0_i32_1 = arith.constant 0 : i32
    return %arg0, %c0_i32, %c0_i32_0 : i32, i32, i32
  }
}

</mosaic_0001>

<bundles_post_ra>
// kernel: encoder_layer_forward.3
= control target key start
LH: loop header
LB: loop body
LE: loop exit
PB: predicated region body
PF: predicated region fallthrough
CT: control target
= control target key end

     0   :  { %s634_s24 = smov 0   ;;  %s691_s0 = inlined_call_operand.vmem [shape: bf16[16,32], index: 0, kind: input, shape index: {}, may-alias: {0,7}]   ;;  %s692_s1 = inlined_call_operand.vmem [shape: f32[1,32], index: 1, kind: input, shape index: {}]   ;;  %s693_s2 = inlined_call_operand.vmem [shape: f32[1,32], index: 2, kind: input, shape index: {}]   ;;  %s694_s3 = inlined_call_operand.vmem [shape: bf16[32,64], index: 3, kind: input, shape index: {}]   ;;  %s695_s4 = inlined_call_operand.vmem [shape: f32[1,64], index: 4, kind: input, shape index: {}]   ;;  %s696_s5 = inlined_call_operand.vmem [shape: bf16[64,32], index: 5, kind: input, shape index: {}]   ;;  %s697_s6 = inlined_call_operand.vmem [shape: f32[1,32], index: 6, kind: input, shape index: {}]   ;;  %s698_s7 = inlined_call_operand.vmem [shape: bf16[16,32], index: 7, kind: output, shape index: {}, may-alias: {0,7}]  }
   0x1 LB: > { %s517_s25 = sadd.s32 4294967295, %s590_s24   ;;  %p521_p0 = scmp.ge.s32.totalorder %s590_s24, 1  ;;  %s590_s24 = sphi %s634_s24, %s17_s24  }
   0x2   : > { %p236_p1 = scmp.lt.s32.totalorder %s590_s24, 3 }
   0x4   : > { %p237_p2 = pnand %p521_p0, %p236_p1 }
   0x5   : > { %p266_p3 = scmp.lt.s32.totalorder (!%p237_p2), %s517_s25, 1  ;;  %vm277_vm0 = vcmask (!%p237_p2), 261120   ;;  %v576_v8 = vld [vmem:[%s694_s3] sm:$0xff] (!%p237_p2)   ;;  %v592_v9 = vmov (!%p237_p2), 0.0   ;;  %v577_v10 = vld [vmem:[%s694_s3 + $0x8] sm:$0xff] (!%p237_p2)   ;;  %vm593_vm1 = vmmov (!%p237_p2), 0  }
   0x6   : > { %240 = sbr.rel (%p237_p2) target bundleno = 771 (0x303), region = 48  ;;  %546 = vmatprep.subr.bf16.mxu0 (!%p237_p2), %v592_v9  ;;  %554 = vmatprep.subr.bf16.mxu1 (!%p237_p2), %v592_v9  ;;  %v578_v11 = vld [vmem:[%s696_s5] sm:$0xff] (!%p237_p2)   ;;  %v579_v12 = vld [vmem:[%s696_s5 + $0x8] sm:$0xff] (!%p237_p2)   ;;  %v580_v23 = vld [vmem:[%s696_s5 + $0x10] sm:$0xff] (!%p237_p2)   ;;  %vm416_vm2 = vcmask (!%p237_p2), 523264   ;;  %vm462_vm3 = vcmask (!%p237_p2), 257024  }
   0x7   : > { %547 = vmatpush3.bf16.msra.mxu0 (!%p237_p2), %v576_v8  ;;  %550 = vmatprep.mubr.msk.bf16.mxu0 (!%p237_p2), %vm593_vm1, %v592_v9  ;;  %v524_v17 = vld [vmem:[%s692_s1] ss:$0 sm:$0xff] (!%p237_p2)  ;;  %v581_v24 = vld [vmem:[%s696_s5 + $0x18] sm:$0xff] (!%p237_p2)  }
   0x8   : > { %548 = vmatprep.subr.bf16.mxu0 (!%p237_p2), %v592_v9  ;;  %562 = vmatprep.mubr.msk.bf16.mxu1 (!%p237_p2), %vm593_vm1, %v592_v9  ;;  %v525_v19 = vld [vmem:[%s693_s2] ss:$0 sm:$0xff] (!%p237_p2) }
   0x9   : > { %555 = vmatpush3.bf16.msra.mxu1 (!%p237_p2), %v578_v11  ;;  %v526_v25 = vld [vmem:[%s695_s4] ss:$0 sm:$0xff] (!%p237_p2) }
   0xa   : > { %556 = vmatprep.subr.bf16.mxu1 (!%p237_p2), %v592_v9  ;;  %v530_v33 = vld [vmem:[%s697_s6] ss:$0 sm:$0xff] (!%p237_p2) }
   0xb   : > { %549 = vmatpush3.bf16.msra.mxu0 (!%p237_p2), %v577_v10 }
   0xd   : > { %s700_s25 = smov (!%p266_p3, %s517_s25), 1  ;;  %557 = vmatpush3.bf16.msra.mxu1 %v579_v12 }
   0xe   : > { %s522_s26 = sshll.u32 %s700_s25, 2  ;;  %558 = vmatprep.subr.bf16.mxu1 %v592_v9 }
   0xf   : > { %s269_s29 = scalar_lea.vmem %s691_s0, %s522_s26  ;;  %s273_s9 = scalar_lea.vmem %s698_s7, %s522_s26 }
  0x10   : > { %v275_v0 = vld [vmem:[%s269_s29] sm:$0xf] }
  0x11   : > { %v276_v1 = vunpack.c.l.bf16 %v275_v0  ;;  %559 = vmatpush3.bf16.msra.mxu1 %v580_v23 }
  0x12   : > { %560 = vmatprep.subr.bf16.mxu1 %v592_v9 }
  0x13   : > { %v278_v2 = vsel %vm277_vm0, %v276_v1, 0.0 }
  0x14   : > { %279 = vadd.xlane.f32.xlu0 %v278_v2 }
  0x15   : > { %561 = vmatpush3.bf16.msra.mxu1 %v581_v24 }
  0xa1   : > { %v280_v3 = vpop.xlane.xlu0 %279 }
  0xa2   : > { %v282_v4 = vmul.f32 0.03125, %v280_v3 }
  0xa4   : > { %v283_v5 = vsub.f32 %v276_v1, %v282_v4 }
  0xa6   : > { %v284_v6 = vmul.f32 %v283_v5, %v283_v5 }
  0xa8   : > { %v285_v7 = vsel %vm277_vm0, %v284_v6, 0.0 }
  0xa9   : > { %286 = vadd.xlane.f32.xlu0 %v285_v7 }
 0x136   : > { %v287_v13 = vpop.xlane.xlu0 %286 }
 0x137   : > { %v288_v14 = vmul.f32 0.03125, %v287_v13 }
 0x139   : > { %v289_v15 = vadd.f32 1e-05, %v288_v14 }
 0x13b   : > { %582 = vrsqrt.f32 %v289_v15 }
 0x145   : > { %v583_v16 = vpop.eup %582 }
 0x146   : > { %v291_v18 = vmul.f32 %v583_v16, %v283_v5 }
 0x148   : > { %v299_v20 = vmul.f32 %v524_v17, %v291_v18 }
 0x14a   : > { %v307_v21 = vadd.f32 %v525_v19, %v299_v20 }
 0x14c   : > { %v308_v22 = vpack.c.bf16 %v307_v21, %v307_v21 }
 0x14e   : > { %551 = vmatmul.mubr.msk.bf16.vlgmr.msra.gmra.mrb[0].mxu0 %vm277_vm0, %v308_v22 }
 0x221   : > { %v369_v26 = vpop.f32.mrb[0].mxu0 }
 0x222   : > { %v370_v27 = vadd.f32 %v526_v25, %v369_v26  ;;  %v552_v28 = vpop.f32.mrb[1].mxu0 }
 0x223   : > { %v372_v29 = vpop.f32.mrb[2].mxu0 }
 0x224   : > { %v375_v30 = vmax.f32 %v370_v27, 0.0  ;;  %v553_v31 = vpop.f32.mrb[3].mxu0 }
 0x226   : > { %v376_v32 = vpack.c.bf16 %v375_v30, %v375_v30 }
 0x228   : > { %563 = vmatmul.mubr.msk.bf16.vlgmr.msra.gmra.mrb[0].mxu1 %vm416_vm2, %v376_v32 }
 0x2fb   : > { %v454_v34 = vpop.f32.mrb[0].mxu1 }
 0x2fc   : > { %v455_v35 = vadd.f32 %v530_v33, %v454_v34  ;;  %v564_v36 = vpop.f32.mrb[1].mxu1 }
 0x2fd   : > { %v457_v37 = vpop.f32.mrb[2].mxu1 }
 0x2fe   : > { %v460_v38 = vadd.f32 %v455_v35, %v276_v1  ;;  %v565_v39 = vpop.f32.mrb[3].mxu1 }
 0x300   : > { %v461_v40 = vpack.c.bf16 %v460_v38, %v460_v38 }
 0x302   : > { %463 = vst.msk [vmem:[%s273_s9] sm:$0xf] %vm462_vm3, %v461_v40 }
 0x303 PF: > { %s17_s24 = sadd.s32 1, %s590_s24  }
 0x304   : > { %p14_p4 = scmp.ge.s32.totalorder %s17_s24, 4  }
 0x306   :  { %16 = sbr.rel (!%p14_p4) target bundleno = 1 (0x1), region = 78 }

// kernel: encoder_layer_forward.2
= control target key start
LH: loop header
LB: loop body
LE: loop exit
PB: predicated region body
PF: predicated region fallthrough
CT: control target
= control target key end

     0   :  { %s1394_s27 = smov 0   ;;  %s1555_s0 = inlined_call_operand.vmem [shape: bf16[2,8,32], index: 0, kind: input, shape index: {}, may-alias: {0,8}]   ;;  %s1556_s1 = inlined_call_operand.vmem [shape: f32[2,1,8], index: 1, kind: input, shape index: {}]   ;;  %s1557_s2 = inlined_call_operand.vmem [shape: f32[1,32], index: 2, kind: input, shape index: {}]   ;;  %s1558_s3 = inlined_call_operand.vmem [shape: f32[1,32], index: 3, kind: input, shape index: {}]   ;;  %s1559_s4 = inlined_call_operand.vmem [shape: bf16[32,96], index: 4, kind: input, shape index: {}]   ;;  %s1560_s5 = inlined_call_operand.vmem [shape: f32[1,96], index: 5, kind: input, shape index: {}]   ;;  %s1561_s6 = inlined_call_operand.vmem [shape: bf16[32,32], index: 6, kind: input, shape index: {}]   ;;  %s1562_s7 = inlined_call_operand.vmem [shape: f32[1,32], index: 7, kind: input, shape index: {}]   ;;  %s1563_s8 = inlined_call_operand.vmem [shape: bf16[2,8,32], index: 8, kind: output, shape index: {}, may-alias: {0,8}]  }
   0x1 LB: > { %s1139_s28 = sadd.s32 4294967295, %s1334_s27   ;;  %p1143_p0 = scmp.ge.s32.totalorder %s1334_s27, 1  ;;  %s1334_s27 = sphi %s1394_s27, %s18_s27  }
   0x2   : > { %p269_p1 = scmp.lt.s32.totalorder %s1334_s27, 3 }
   0x4   : > { %p270_p2 = pnand %p1143_p0, %p269_p1 }
   0x5   : > { %p304_p3 = scmp.lt.s32.totalorder (!%p270_p2), %s1139_s28, 1  ;;  %vm318_vm0 = vcmask (!%p270_p2), 261120   ;;  %v1308_v8 = vld [vmem:[%s1559_s4] sm:$0xff] (!%p270_p2)   ;;  %v1336_v9 = vmov (!%p270_p2), 0.0   ;;  %vm1337_vm1 = vmmov (!%p270_p2), 0   ;;  %v1309_v10 = vld [vmem:[%s1559_s4 + $0x8] sm:$0xff] (!%p270_p2)   ;;  %v431_v34 = vlaneseq (!%p270_p2) }
   0x6   : > { %273 = sbr.rel (%p270_p2) target bundleno = 2718 (0xa9e), region = 52  ;;  %1194 = vmatprep.subr.bf16.mxu0 (!%p270_p2), %v1336_v9  ;;  %1198 = vmatprep.mubr.msk.bf16.mxu0 (!%p270_p2), %vm1337_vm1, %v1336_v9  ;;  %v1146_v15 = vld [vmem:[%s1557_s2] ss:$0 sm:$0xff] (!%p270_p2)  ;;  %s1338_s21 = smov (!%p270_p2), 64   ;;  %vm503_vm2 = vcmask (!%p270_p2), 1043456   ;;  %vm439_vm3 = vcmask (!%p270_p2), 64512  }
   0x7   : > { %1195 = vmatpush3.bf16.msra.mxu0 (!%p270_p2), %v1308_v8  ;;  %1202 = vmatprep.subr.bf16.mxu1 (!%p270_p2), %v1336_v9  ;;  %v1147_v17 = vld [vmem:[%s1558_s3] ss:$0 sm:$0xff] (!%p270_p2)  ;;  %s1339_s22 = smov (!%p270_p2), 96   ;;  %v432_v36 = vshrl.u32 (!%p270_p2), %v431_v34, 7  ;;  %s1340_s26 = smov (!%p270_p2), 80   ;;  %vm1075_vm5 = vcmask (!%p270_p2), 257024  }
   0x8   : > { %1196 = vmatprep.subr.bf16.mxu0 (!%p270_p2), %v1336_v9  ;;  %1204 = vmatprep.mubr.msk.bf16.mxu1 (!%p270_p2), %vm1337_vm1, %v1336_v9  ;;  %v1148_v21 = vld [vmem:[%s1560_s5] ss:$0 sm:$0xff] (!%p270_p2)  ;;  %s1341_s30 = smov (!%p270_p2), 88   ;;  %s1342_s9 = smov (!%p270_p2), 120  }
   0x9   : > { %v433_v37 = vsub.s32 (!%p270_p2), 0, %v432_v36  ;;  %v548_v61 = vld [vmem:[%s1561_s6] sm:$0xf] (!%p270_p2)  ;;  %s1344_s13 = smov (!%p270_p2), 48   ;;  %s1345_s14 = smov (!%p270_p2), 104  }
   0xa   : > { %v553_v62 = vsel (!%p270_p2), %vm503_vm2, %v548_v61, 0  ;;  %s1346_s15 = smov (!%p270_p2), 56   ;;  %s1347_s16 = smov (!%p270_p2), 72  }
   0xb   : > { %1197 = vmatpush3.bf16.msra.mxu0 (!%p270_p2), %v1309_v10 }
   0xc   : > { %1208 = vmatprep.subr.bf16.mxu0 (!%p270_p2), %v1336_v9 }
   0xd   : > { %s1565_s28 = smov (!%p304_p3, %s1139_s28), 1 }
   0xe   : > { %s1144_s29 = sshll.u32 %s1565_s28, 2  ;;  %s310_s25 = scalar_lea.vmem %s1556_s1, %s1565_s28 }
   0xf   : > { %s307_s10 = scalar_lea.vmem %s1555_s0, %s1144_s29  ;;  %v416_v35 = vld [vmem:[%s310_s25] sm:$0x1] }
  0x10   : > { %v316_v0 = vld [vmem:[%s307_s10] sm:$0xf]  ;;  %vm417_vm4 = vcmp.eq.f32.partialorder %v416_v35, 0.0  ;;  %s1343_s10 = smov 112  }
  0x11   : > { %v1410_v1 = vunpack.c.l.bf16 %v316_v0  ;;  %v418_v38 = vsel %vm417_vm4, -1e+09, %v1336_v9 }
  0x12   : > { %v1461_v39 = vrot.slane %v418_v38, %v433_v37 }
  0x13   : > { %v319_v2 = vsel %vm318_vm0, %v1410_v1, 0.0 }
  0x14   : > { %320 = vadd.xlane.f32.xlu0 %v319_v2 }
  0xa1   : > { %v321_v3 = vpop.xlane.xlu0 %320 }
  0xa2   : > { %v323_v4 = vmul.f32 0.03125, %v321_v3 }
  0xa4   : > { %v324_v5 = vsub.f32 %v1410_v1, %v323_v4 }
  0xa6   : > { %v325_v6 = vmul.f32 %v324_v5, %v324_v5 }
  0xa8   : > { %v326_v7 = vsel %vm318_vm0, %v325_v6, 0.0 }
  0xa9   : > { %327 = vadd.xlane.f32.xlu0 %v326_v7 }
 0x136   : > { %v328_v11 = vpop.xlane.xlu0 %327 }
 0x137   : > { %v329_v12 = vmul.f32 0.03125, %v328_v11 }
 0x139   : > { %v330_v13 = vadd.f32 1e-05, %v329_v12 }
 0x13b   : > { %1310 = vrsqrt.f32 %v330_v13 }
 0x145   : > { %v1311_v14 = vpop.eup %1310 }
 0x146   : > { %v332_v16 = vmul.f32 %v1311_v14, %v324_v5 }
 0x148   : > { %v340_v18 = vmul.f32 %v1146_v15, %v332_v16 }
 0x14a   : > { %v348_v19 = vadd.f32 %v1147_v17, %v340_v18 }
 0x14c   : > { %v349_v20 = vpack.c.bf16 %v348_v19, %v348_v19 }
 0x14e   : > { %1199 = vmatmul.mubr.msk.bf16.vlgmr.msra.gmra.mrb[0].mxu0 %vm318_vm0, %v349_v20 }
 0x14f   : > { %1210 = vmatprep.mubr.msk.bf16.mxu0 %vm1337_vm1, %v1336_v9 }
 0x221   : > { %v410_v22 = vpop.f32.mrb[0].mxu0 }
 0x222   : > { %v411_v23 = vadd.f32 %v1148_v21, %v410_v22  ;;  %v1200_v24 = vpop.f32.mrb[1].mxu0 }
 0x223   : > { %v413_v25 = vpop.f32.mrb[2].mxu0 }
 0x224   : > { %v1442_v26 = vpack.c.bf16 %v411_v23, %v411_v23  ;;  %v1201_v27 = vpop.f32.mrb[3].mxu0  ;;  %v427_v32 = vmul.f32 0.35355338, %v411_v23 }
 0x226   : > { %498 = vrot.lane.b32.xlu0 %v1442_v26, %s1338_s21  ;;  %437 = vrot.lane.b32.xlu1 %v1442_v26, %s1339_s22  ;;  %v1450_v33 = vpack.c.bf16 %v427_v32, %v427_v32  ;;  %s1348_s21 = smov 40  }
 0x298   : > { %v499_v28 = vpop.permute.xlu0 %498  ;;  %v438_v29 = vpop.permute.xlu1 %437 }
 0x299   : > { %v505_v30 = vsel %vm503_vm2, %v499_v28, 0  ;;  %v444_v31 = vsel %vm439_vm3, %v438_v29, 0 }
 0x29a   : > { %1203 = vmatpush3.bf16.xpose.msra.mxu1 %v444_v31  ;;  %1209 = vmatpush3.bf16.msra.mxu0 %v505_v30 }
 0x29b   : > { %1220 = vmatprep.subr.bf16.mxu0 %v1336_v9  ;;  %1214 = vmatprep.subr.bf16.mxu1 %v1336_v9 }
 0x2a1   : > { %1205 = vmatmul.mubr.msk.bf16.vlgmr.msra.gmra.mrb[0].mxu1 %vm439_vm3, %v1450_v33 }
 0x2a2   : > { %1216 = vmatprep.mubr.msk.bf16.mxu1 %vm1337_vm1, %v1336_v9  ;;  %1215 = vmatpush3.bf16.msra.mxu1 %v553_v62 }
 0x2a3   : > { %1226 = vmatprep.subr.bf16.mxu1 %v1336_v9 }
 0x374   : > { %v480_v40 = vpop.f32.mrb[0].mxu1 }
 0x375   : > { %v481_v41 = vadd.f32 %v480_v40, %v1461_v39  ;;  %v1206_v42 = vpop.f32.mrb[1].mxu1 }
 0x376   : > { %v483_v43 = vpop.f32.mrb[2].mxu1 }
 0x377   : > { %v1207_v44 = vpop.f32.mrb[3].mxu1  ;;  %v486_v45 = vsel %vm439_vm3, %v481_v41, -inf }
 0x378   : > { %487 = vmax.xlane.f32.xlu1 %v486_v45  ;;  %v708_v45 = vld [vmem:[%s1561_s6 + $0x4] sm:$0xf] }
 0x389   : > { %758 = vrot.lane.b32.xlu1 %v1442_v26, %s1340_s26 }
 0x405   : > { %v488_v46 = vpop.xlane.xlu1 %487 }
 0x406   : > { %v489_v47 = vsub.f32 %v481_v41, %v488_v46  ;;  %v713_v46 = vsel %vm503_vm2, %v708_v45, 0 }
 0x408   : > { %v490_v48 = vmul.f32 1.442695, %v489_v47 }
 0x409   : > { %v759_v57 = vpop.permute.xlu1 %758 }
 0x40a   : > { %1312 = vpow2.f32 %v490_v48  ;;  %v764_v59 = vsel %vm439_vm3, %v759_v57, 0  ;;  %v867_v57 = vld [vmem:[%s1561_s6 + $0x8] sm:$0xf] }
 0x40b   : > { %v872_v61 = vsel %vm503_vm2, %v867_v57, 0 }
 0x414   : > { %v1313_v49 = vpop.eup %1312 }
 0x415   : > { %v492_v50 = vsel %vm439_vm3, %v1313_v49, 0.0 }
 0x416   : > { %493 = vadd.xlane.f32.xlu0 %v492_v50 }
 0x42c   : > { %599 = vrot.lane.b32.xlu0 %v1442_v26, %s1341_s30 }
 0x430   : > { %597 = vrot.lane.b32.xlu0 %v1450_v33, %s1342_s9  ;;  %s314_s9 = scalar_lea.vmem %s1563_s8, %s1144_s29 }
 0x434   : > { %756 = vrot.lane.b32.xlu0 %v1450_v33, %s1343_s10 }
 0x4a3   : > { %v494_v51 = vpop.xlane.xlu0 %493 }
 0x4a4   : > { %1314 = vrcp.f32 %v494_v51 }
 0x4a7   : > { %v600_v54 = vpop.permute.xlu0 %599 }
 0x4a8   : > { %v605_v56 = vsel %vm439_vm3, %v600_v54, 0 }
 0x4ab   : > { %v598_v58 = vpop.permute.xlu0 %597 }
 0x4ae   : > { %v1315_v52 = vpop.eup %1314 }
 0x4af   : > { %v496_v53 = vmul.f32 %v1315_v52, %v1313_v49  ;;  %v757_v60 = vpop.permute.xlu0 %756 }
 0x4b1   : > { %v497_v55 = vpack.c.bf16 %v496_v53, %v496_v53 }
 0x4b3   : > { %1211 = vmatmul.mubr.msk.bf16.vlgmr.msra.gmra.mrb[4].mxu0 %vm439_vm3, %v497_v55 }
 0x4b4   : > { %1221 = vmatpush3.bf16.xpose.msra.mxu0 %v605_v56  ;;  %1222 = vmatprep.mubr.msk.bf16.mxu0 %vm1337_vm1, %v1336_v9 }
 0x4b5   : > { %1238 = vmatprep.subr.bf16.mxu0 %v1336_v9 }
 0x4bb   : > { %1223 = vmatmul.mubr.msk.bf16.vlgmr.msra.gmra.mrb[8].mxu0 %vm439_vm3, %v598_v58 }
 0x4bc   : > { %1239 = vmatpush3.bf16.xpose.msra.mxu0 %v764_v59  ;;  %1240 = vmatprep.mubr.msk.bf16.mxu0 %vm1337_vm1, %v1336_v9 }
 0x4bd   : > { %1244 = vmatprep.subr.bf16.mxu0 %v1336_v9 }
 0x4c3   : > { %1241 = vmatmul.mubr.msk.bf16.vlgmr.msra.gmra.mrb[12].mxu0 %vm439_vm3, %v757_v60 }
 0x4c4   : > { %1246 = vmatprep.mubr.msk.bf16.mxu0 %vm1337_vm1, %v1336_v9 }
 0x586   : > { %v541_v63 = vpop.f32.mrb[4].mxu0 }
 0x587   : > { %v547_v0 = vpack.c.bf16 %v541_v63, %v541_v63  ;;  %v1212_v2 = vpop.f32.mrb[5].mxu0 }
 0x588   : > { %v544_v3 = vpop.f32.mrb[6].mxu0 }
 0x589   : > { %v1213_v4 = vpop.f32.mrb[7].mxu0  ;;  %1217 = vmatmul.mubr.msk.bf16.vlgmr.msra.gmra.mrb[4].mxu1 %vm439_vm3, %v547_v0 }
 0x58a   : > { %1228 = vmatprep.mubr.msk.bf16.mxu1 %vm1337_vm1, %v1336_v9 }
 0x58e   : > { %v641_v5 = vpop.f32.mrb[8].mxu0 }
 0x58f   : > { %v1224_v6 = vpop.f32.mrb[9].mxu0  ;;  %v642_v16 = vadd.f32 %v641_v5, %v1461_v39 }
 0x590   : > { %v644_v7 = vpop.f32.mrb[10].mxu0 }
 0x591   : > { %v1225_v8 = vpop.f32.mrb[11].mxu0  ;;  %v647_v17 = vsel %vm439_vm3, %v642_v16, -inf }
 0x596   : > { %v800_v10 = vpop.f32.mrb[12].mxu0 }
 0x597   : > { %v801_v11 = vadd.f32 %v800_v10, %v1461_v39  ;;  %v1242_v12 = vpop.f32.mrb[13].mxu0 }
 0x598   : > { %v803_v13 = vpop.f32.mrb[14].mxu0 }
 0x599   : > { %v1243_v14 = vpop.f32.mrb[15].mxu0  ;;  %v806_v15 = vsel %vm439_vm3, %v801_v11, -inf }
 0x59a   : > { %807 = vmax.xlane.f32.xlu0 %v806_v15 }
 0x5b0   : > { %818 = vrot.lane.b32.xlu0 %v1442_v26, %s1344_s13 }
 0x5b4   : > { %915 = vrot.lane.b32.xlu0 %v1450_v33, %s1345_s14 }
 0x5d3   : > { %648 = vmax.xlane.f32.xlu0 %v647_v17 }
 0x5e9   : > { %659 = vrot.lane.b32.xlu0 %v1442_v26, %s1346_s15 }
 0x627   : > { %v808_v18 = vpop.xlane.xlu0 %807 }
 0x628   : > { %v809_v19 = vsub.f32 %v801_v11, %v808_v18  ;;  %v1026_v11 = vld [vmem:[%s1561_s6 + $0xc] sm:$0xf] }
 0x629   : > { %v1031_v14 = vsel %vm503_vm2, %v1026_v11, 0 }
 0x62a   : > { %v810_v20 = vmul.f32 1.442695, %v809_v19  ;;  %v1152_v19 = vld [vmem:[%s1562_s7] ss:$0 sm:$0xff] }
 0x62b   : > { %v819_v21 = vpop.permute.xlu0 %818 }
 0x62c   : > { %1316 = vpow2.f32 %v810_v20  ;;  %v824_v22 = vsel %vm503_vm2, %v819_v21, 0  ;;  %v426_v20 = vadd.f32 %v1152_v19, %v1410_v1 }
 0x62d   : > { %1245 = vmatpush3.bf16.msra.mxu0 %v824_v22 }
 0x62e   : > { %1256 = vmatprep.subr.bf16.mxu0 %v1336_v9 }
 0x62f   : > { %v916_v25 = vpop.permute.xlu0 %915 }
 0x636   : > { %v1317_v23 = vpop.eup %1316 }
 0x637   : > { %v812_v24 = vsel %vm439_vm3, %v1317_v23, 0.0 }
 0x638   : > { %813 = vadd.xlane.f32.xlu1 %v812_v24 }
 0x649   : > { %917 = vrot.lane.b32.xlu1 %v1442_v26, %s1347_s16 }
 0x660   : > { %v649_v27 = vpop.xlane.xlu0 %648 }
 0x661   : > { %v650_v28 = vsub.f32 %v642_v16, %v649_v27 }
 0x663   : > { %v651_v29 = vmul.f32 1.442695, %v650_v28 }
 0x664   : > { %v660_v30 = vpop.permute.xlu0 %659 }
 0x665   : > { %1318 = vpow2.f32 %v651_v29  ;;  %v665_v31 = vsel %vm503_vm2, %v660_v30, 0 }
 0x666   : > { %1227 = vmatpush3.bf16.msra.mxu1 %v665_v31 }
 0x667   : > { %1232 = vmatprep.subr.bf16.mxu1 %v1336_v9 }
 0x66f   : > { %v1319_v32 = vpop.eup %1318 }
 0x670   : > { %v653_v33 = vsel %vm439_vm3, %v1319_v32, 0.0 }
 0x671   : > { %654 = vadd.xlane.f32.xlu1 %v653_v33 }
 0x6c5   : > { %v814_v34 = vpop.xlane.xlu1 %813 }
 0x6c6   : > { %1320 = vrcp.f32 %v814_v34 }
 0x6c9   : > { %v918_v37 = vpop.permute.xlu1 %917 }
 0x6ca   : > { %v923_v40 = vsel %vm439_vm3, %v918_v37, 0 }
 0x6d0   : > { %v1321_v35 = vpop.eup %1320 }
 0x6d1   : > { %v816_v36 = vmul.f32 %v1321_v35, %v1317_v23 }
 0x6d3   : > { %v817_v38 = vpack.c.bf16 %v816_v36, %v816_v36 }
 0x6d5   : > { %1247 = vmatmul.mubr.msk.bf16.vlgmr.msra.gmra.mrb[16].mxu0 %vm439_vm3, %v817_v38 }
 0x6d6   : > { %1257 = vmatpush3.bf16.xpose.msra.mxu0 %v923_v40  ;;  %1258 = vmatprep.mubr.msk.bf16.mxu0 %vm1337_vm1, %v1336_v9 }
 0x6dd   : > { %1259 = vmatmul.mubr.msk.bf16.vlgmr.msra.gmra.mrb[20].mxu0 %vm439_vm3, %v916_v25 }
 0x6fe   : > { %v655_v41 = vpop.xlane.xlu1 %654 }
 0x6ff   : > { %1322 = vrcp.f32 %v655_v41 }
 0x709   : > { %v1323_v42 = vpop.eup %1322 }
 0x70a   : > { %v657_v43 = vmul.f32 %v1323_v42, %v1319_v32 }
 0x70c   : > { %v658_v44 = vpack.c.bf16 %v657_v43, %v657_v43 }
 0x70e   : > { %1229 = vmatmul.mubr.msk.bf16.vlgmr.msra.gmra.mrb[8].mxu1 %vm439_vm3, %v658_v44 }
 0x70f   : > { %1234 = vmatprep.mubr.msk.bf16.mxu1 %vm1337_vm1, %v1336_v9  ;;  %1233 = vmatpush3.bf16.msra.mxu1 %v713_v46 }
 0x710   : > { %1250 = vmatprep.subr.bf16.mxu1 %v1336_v9 }
 0x7a8   : > { %v860_v47 = vpop.f32.mrb[16].mxu0 }
 0x7a9   : > { %v1248_v48 = vpop.f32.mrb[17].mxu0 }
 0x7aa   : > { %v863_v49 = vpop.f32.mrb[18].mxu0 }
 0x7ab   : > { %v1249_v50 = vpop.f32.mrb[19].mxu0 }
 0x7b0   : > { %v959_v51 = vpop.f32.mrb[20].mxu0 }
 0x7b1   : > { %v960_v52 = vadd.f32 %v959_v51, %v1461_v39  ;;  %v1260_v53 = vpop.f32.mrb[21].mxu0  ;;  %v866_v39 = vpack.c.bf16 %v860_v47, %v860_v47 }
 0x7b2   : > { %v962_v54 = vpop.f32.mrb[22].mxu0 }
 0x7b3   : > { %v1261_v55 = vpop.f32.mrb[23].mxu0  ;;  %v965_v56 = vsel %vm439_vm3, %v960_v52, -inf }
 0x7b4   : > { %966 = vmax.xlane.f32.xlu1 %v965_v56 }
 0x7e1   : > { %v701_v58 = vpop.f32.mrb[8].mxu1 }
 0x7e2   : > { %v707_v59 = vpack.c.bf16 %v701_v58, %v701_v58  ;;  %v1230_v60 = vpop.f32.mrb[9].mxu1 }
 0x7e3   : > { %v704_v62 = vpop.f32.mrb[10].mxu1 }
 0x7e4   : > { %v1231_v63 = vpop.f32.mrb[11].mxu1  ;;  %1235 = vmatmul.mubr.msk.bf16.vlgmr.msra.gmra.mrb[4].mxu1 %vm439_vm3, %v707_v59 }
 0x7e5   : > { %1251 = vmatpush3.bf16.msra.mxu1 %v872_v61  ;;  %1252 = vmatprep.mubr.msk.bf16.mxu1 %vm1337_vm1, %v1336_v9 }
 0x7e6   : > { %1262 = vmatprep.subr.bf16.mxu1 %v1336_v9 }
 0x7f0   : > { %1253 = vmatmul.mubr.msk.bf16.vlgmr.msra.gmra.mrb[4].mxu1 %vm439_vm3, %v866_v39 }
 0x7f1   : > { %1264 = vmatprep.mubr.msk.bf16.mxu1 %vm1337_vm1, %v1336_v9 }
 0x841   : > { %v967_v0 = vpop.xlane.xlu1 %966 }
 0x842   : > { %v968_v2 = vsub.f32 %v960_v52, %v967_v0 }
 0x844   : > { %v969_v3 = vmul.f32 1.442695, %v968_v2 }
 0x846   : > { %1324 = vpow2.f32 %v969_v3 }
 0x850   : > { %v1325_v4 = vpop.eup %1324 }
 0x851   : > { %v971_v5 = vsel %vm439_vm3, %v1325_v4, 0.0 }
 0x852   : > { %972 = vadd.xlane.f32.xlu1 %v971_v5 }
 0x863   : > { %977 = vrot.lane.b32.xlu1 %v1442_v26, %s1348_s21 }
 0x8df   : > { %v973_v6 = vpop.xlane.xlu1 %972 }
 0x8e0   : > { %1326 = vrcp.f32 %v973_v6 }
 0x8e3   : > { %v978_v7 = vpop.permute.xlu1 %977 }
 0x8e4   : > { %v983_v8 = vsel %vm503_vm2, %v978_v7, 0 }
 0x8e5   : > { %1263 = vmatpush3.bf16.msra.mxu1 %v983_v8 }
 0x8e6   : > { %1268 = vmatprep.subr.bf16.mxu1 %v1336_v9 }
 0x8ea   : > { %v1327_v10 = vpop.eup %1326 }
 0x8eb   : > { %v975_v12 = vmul.f32 %v1327_v10, %v1325_v4 }
 0x8ed   : > { %v976_v13 = vpack.c.bf16 %v975_v12, %v975_v12 }
 0x8ef   : > { %1265 = vmatmul.mubr.msk.bf16.vlgmr.msra.gmra.mrb[12].mxu1 %vm439_vm3, %v976_v13 }
 0x8f0   : > { %1269 = vmatpush3.bf16.msra.mxu1 %v1031_v14  ;;  %1270 = vmatprep.mubr.msk.bf16.mxu1 %vm1337_vm1, %v1336_v9 }
 0x9c2   : > { %v1019_v26 = vpop.f32.mrb[12].mxu1 }
 0x9c3   : > { %v1025_v15 = vpack.c.bf16 %v1019_v26, %v1019_v26  ;;  %v1266_v16 = vpop.f32.mrb[13].mxu1 }
 0x9c4   : > { %v1022_v17 = vpop.f32.mrb[14].mxu1 }
 0x9c5   : > { %v1267_v18 = vpop.f32.mrb[15].mxu1  ;;  %1271 = vmatmul.mubr.msk.bf16.vlgmr.msra.gmra.mrb[4].mxu1 %vm439_vm3, %v1025_v15 }
 0xa98   : > { %v1067_v21 = vpop.f32.mrb[4].mxu1 }
 0xa99   : > { %v1274_v22 = vadd.f32 %v1067_v21, %v426_v20  ;;  %v1272_v23 = vpop.f32.mrb[5].mxu1 }
 0xa9a   : > { %v1070_v9 = vpop.f32.mrb[6].mxu1 }
 0xa9b   : > { %v1074_v24 = vpack.c.bf16 %v1274_v22, %v1274_v22  ;;  %v1273_v25 = vpop.f32.mrb[7].mxu1 }
 0xa9d   : > { %1076 = vst.msk [vmem:[%s314_s9] sm:$0xf] %vm1075_vm5, %v1074_v24 }
 0xa9e PF: > { %s18_s27 = sadd.s32 1, %s1334_s27  }
 0xa9f   : > { %p15_p4 = scmp.ge.s32.totalorder %s18_s27, 4  }
 0xaa1   :  { %17 = sbr.rel (!%p15_p4) target bundleno = 1 (0x1), region = 85 }

</bundles_post_ra>
